<compile_context>
chip_gen: v5e
topology: v5e:2x2
jax: 0.10.0
libtpu: 0.0.40
codegen_flags: <defaults>
</compile_context>

<pallas_src>
import math

import jax
import jax.numpy as jnp
from jax import lax
from jax.experimental import pallas as pl
from jax.experimental.pallas import tpu as pltpu


_EPS = 1e-12           # F.normalize default eps
_EPS2 = _EPS * _EPS    # max(sqrt(s), eps) == sqrt(max(s, eps^2))


def _normed_matmul_kernel(x_ref, w_ref, rx_ref, rw_ref, o_ref, acc_ref):
    """One (TB, TO) output tile; grid axis 2 is the K (in_features) reduction.

    x_ref : (TB, TK) native dtype (fed to the MXU as-is)
    w_ref : (TO, TK) native dtype
    rx_ref: (TB, 1)  f32   precomputed  eta / max(||x_row||, eps)
    rw_ref: (1, TO)  f32   precomputed  1   / max(||w_row||, eps)
    o_ref : (TB, TO) out   acc_ref: (TB, TO) f32 scratch accumulator
    """
    k = pl.program_id(2)

    @pl.when(k == 0)
    def _():
        acc_ref[...] = jnp.zeros_like(acc_ref)

    acc_ref[...] += lax.dot_general(
        x_ref[...], w_ref[...],
        dimension_numbers=(((1,), (1,)), ((), ())),
        preferred_element_type=jnp.float32,
    )

    @pl.when(k == pl.num_programs(2) - 1)
    def _():
        # Rank-1 diagonal scaling epilogue, then cast to output dtype.
        o_ref[...] = (acc_ref[...] * rx_ref[...] * rw_ref[...]).astype(o_ref.dtype)


def _vmem_cap_bytes():
    """Per-generation VMEM budget (~60% of physical; v7x has only 64 MiB/TC)."""
    try:
        cap = int(pltpu.get_tpu_info().vmem_capacity_bytes)
    except Exception:
        cap = 64 * 1024 * 1024  # conservative: assume v7x per-TC capacity
    return max(int(0.6 * cap), 16 * 1024 * 1024)


def _pick_tk(D, candidates=(512, 1024, 256, 2048, 128)):
    """K tile: lane-aligned exact divisor of D (garbage K padding would corrupt
    the accumulation), else the full D."""
    if D <= candidates[0]:
        return D
    for c in candidates:
        if D % c == 0:
            return c
    # TODO(synk): zero-pad D in the wrapper for huge non-128-divisible widths.
    return D


def _need_bytes(tb, to, tk, x_item, w_item, o_item):
    # double-buffered input/output tiles + one f32 accumulator scratch
    return (2 * (tb * tk * x_item + to * tk * w_item
                 + tb * 4 + to * 4 + tb * to * o_item)
            + tb * to * 4)


def _normed_matmul(x, rx, w, rw, *, tile_b=512, tile_o=256):
    """out[b,o] = rx[b] * rw[o] * (x @ w.T)[b,o]   (rx/rw precomputed, f32)."""
    B, D = x.shape
    O, D2 = w.shape
    assert D == D2, (D, D2)

    # Lane-dense stores for tiny heads: pad O up to 128 (padded rows are zero
    # and their rw is zero, so padded output columns are exactly 0; sliced off).
    O_pad = 128 if O < 128 else O
    if O_pad != O:
        w = jnp.pad(w, ((0, O_pad - O), (0, 0)))
        rw = jnp.pad(rw, ((0, O_pad - O),))
    rw = rw.reshape(1, O_pad).astype(jnp.float32)
    rx = rx.reshape(B, 1).astype(jnp.float32)

    # ---- tile selection -------------------------------------------------
    tb = B if B <= tile_b else tile_b            # multiple of 8, or == B
    to = O_pad if O_pad <= tile_o else tile_o    # multiple of 128, or == O_pad
    tk = _pick_tk(D)

    cap = _vmem_cap_bytes()
    if tb != B:  # only shrink pre-aligned tiles (keeps tb a multiple of 8)
        while (_need_bytes(tb, to, tk, x.dtype.itemsize, w.dtype.itemsize,
                           x.dtype.itemsize) * 3 // 2 > cap) and tb > 64:
            tb //= 2
    need = _need_bytes(tb, to, tk, x.dtype.itemsize, w.dtype.itemsize,
                       x.dtype.itemsize)
    vmem_limit = int(min(max(need * 3 // 2, 32 * 1024 * 1024), cap))

    g_b = pl.cdiv(B, tb)
    g_o = pl.cdiv(O_pad, to)
    g_k = pl.cdiv(D, tk)   # exact: tk divides D or tk == D

    # ---- loop-order selection: re-stream the smaller operand ------------
    batch_outer_bytes = (B * D * x.dtype.itemsize
                         + g_b * O_pad * D * w.dtype.itemsize)
    out_outer_bytes = (O_pad * D * w.dtype.itemsize
                       + g_o * B * D * x.dtype.itemsize)
    batch_outer = batch_outer_bytes <= out_outer_bytes

    if batch_outer:
        grid = (g_b, g_o, g_k)
        x_map = lambda i, j, k: (i, k)
        w_map = lambda i, j, k: (j, k)
        rx_map = lambda i, j, k: (i, 0)
        rw_map = lambda i, j, k: (0, j)
        o_map = lambda i, j, k: (i, j)
    else:
        grid = (g_o, g_b, g_k)
        x_map = lambda j, i, k: (i, k)
        w_map = lambda j, i, k: (j, k)
        rx_map = lambda j, i, k: (i, 0)
        rw_map = lambda j, i, k: (0, j)
        o_map = lambda j, i, k: (i, j)

    out = pl.pallas_call(
        _normed_matmul_kernel,
        out_shape=jax.ShapeDtypeStruct((B, O_pad), x.dtype),
        grid_spec=pltpu.PrefetchScalarGridSpec(
            num_scalar_prefetch=0,
            grid=grid,
            in_specs=[
                pl.BlockSpec((tb, tk), x_map),   # x batch/K tile
                pl.BlockSpec((to, tk), w_map),   # weight row/K tile
                pl.BlockSpec((tb, 1), rx_map),   # per-row scale (eta folded in)
                pl.BlockSpec((1, to), rw_map),   # per-column scale
            ],
            out_specs=pl.BlockSpec((tb, to), o_map),
            scratch_shapes=[pltpu.VMEM((tb, to), jnp.float32)],
        ),
        compiler_params=pltpu.CompilerParams(
            dimension_semantics=("parallel", "parallel", "arbitrary"),
            vmem_limit_bytes=vmem_limit,
        ),
    )(x, w, rx, rw)

    return out if O_pad == O else out[:, :O]


def split_normed_linear(x, w1, w2, eta, *, tile_b=512, tile_o=256):
    """x: (B, D); w1: (O1, D); w2: (O2, D); eta scalar -> (B, O1 + O2)."""
    eps2 = jnp.float32(_EPS2)

    # Row-norm scales computed ONCE in the wrapper (x norms shared by both heads).
    x32 = x.astype(jnp.float32)
    rx = jnp.asarray(eta, jnp.float32) * lax.rsqrt(
        jnp.maximum(jnp.sum(x32 * x32, axis=1, keepdims=True), eps2))  # (B, 1)

    def _row_rnorm(w):
        w32 = w.astype(jnp.float32)
        return lax.rsqrt(jnp.maximum(jnp.sum(w32 * w32, axis=1), eps2))  # (O,)

    out1 = _normed_matmul(x, rx, w1, _row_rnorm(w1), tile_b=tile_b, tile_o=tile_o)
    out2 = _normed_matmul(x, rx, w2, _row_rnorm(w2), tile_b=tile_b, tile_o=tile_o)
    # TODO(synk): single fused pallas_call over both heads to drop this concat.
    return jnp.concatenate([out1, out2], axis=1)


def _reference(x, w1, w2, eta):
    eps = _EPS
    xn = x / jnp.maximum(jnp.linalg.norm(x, axis=1, keepdims=True), eps)
    w1n = w1 / jnp.maximum(jnp.linalg.norm(w1, axis=1, keepdims=True), eps)
    w2n = w2 / jnp.maximum(jnp.linalg.norm(w2, axis=1, keepdims=True), eps)
    return eta * jnp.concatenate([xn @ w1n.T, xn @ w2n.T], axis=1)


if __name__ == "__main__":
    # Small shapes consistent with the module's forward: x is (batch, in_features).
    B, D, O1, O2 = 8, 32, 16, 16

    key = jax.random.PRNGKey(0)
    kx, k1, k2 = jax.random.split(key, 3)

    # Parameter init mirroring NormedLinear.reset_parameters:
    # weight ~ U(-stdv, stdv), stdv = 1/sqrt(in_features); eta = 1.0.
    stdv = 1.0 / math.sqrt(D)
    w1 = jax.random.uniform(k1, (O1, D), jnp.float32, -stdv, stdv)
    w2 = jax.random.uniform(k2, (O2, D), jnp.float32, -stdv, stdv)
    eta = jnp.float32(1.0)

    x = jax.random.normal(kx, (B, D), jnp.float32)

    out = split_normed_linear(x, w1, w2, eta)
    out = jax.block_until_ready(out)

    ref = _reference(x, w1, w2, eta)
    assert out.shape == (B, O1 + O2), out.shape
    err = float(jnp.max(jnp.abs(out - ref)))
    assert jnp.allclose(out, ref, atol=1e-4, rtol=1e-4), err

    print("KERNEL_OK")
</pallas_src>

<mosaic_0001>
module attributes {stable_mosaic.version = 11 : i64} {
  func.func @_normed_matmul_kernel(%arg0: i32, %arg1: i32, %arg2: i32, %arg3: memref<8x32xf32, #tpu.memory_space<vmem>>, %arg4: memref<128x32xf32, #tpu.memory_space<vmem>>, %arg5: memref<8x1xf32, #tpu.memory_space<vmem>>, %arg6: memref<1x128xf32, #tpu.memory_space<vmem>>, %arg7: memref<8x128xf32, #tpu.memory_space<vmem>>, %arg8: memref<8x128xf32, #tpu.memory_space<vmem>>) attributes {dimension_semantics = [#tpu.dimension_semantics<parallel>, #tpu.dimension_semantics<parallel>, #tpu.dimension_semantics<arbitrary>], iteration_bounds = array<i64: 1, 1, 1>, scalar_prefetch = 0 : i64, scratch_operands = 1 : i64, tpu.core_type = #tpu.core_type<tc>, window_params = [{transform_indices = @transform_0, window_bounds = array<i64: 8, 32>}, {transform_indices = @transform_1, window_bounds = array<i64: 128, 32>}, {transform_indices = @transform_2, window_bounds = array<i64: 8, 1>}, {transform_indices = @transform_3, window_bounds = array<i64: 1, 128>}, {transform_indices = @transform_4, window_bounds = array<i64: 8, 128>}]} {
    %c0_i32 = arith.constant 0 : i32
    %0 = arith.cmpi eq, %arg2, %c0_i32 : i32
    %1 = arith.extui %0 : i1 to i32
    %c0_i32_0 = arith.constant 0 : i32
    %2 = arith.cmpi ne, %1, %c0_i32_0 : i32
    scf.if %2 {
      %cst_10 = arith.constant 0.000000e+00 : f32
      %12 = vector.broadcast %cst_10 : f32 to vector<8x128xf32>
      %c0_11 = arith.constant 0 : index
      %c0_12 = arith.constant 0 : index
      %13 = vector.load %arg8[%c0_11, %c0_12] : memref<8x128xf32, #tpu.memory_space<vmem>>, vector<8x128xf32>
      tpu.vector_store %arg8[%c0_11, %c0_12], %12 {strides = array<i32>} : memref<8x128xf32, #tpu.memory_space<vmem>>, vector<8x128xf32>,
    } else {
    }
    %c0 = arith.constant 0 : index
    %c0_1 = arith.constant 0 : index
    %3 = vector.load %arg8[%c0, %c0_1] : memref<8x128xf32, #tpu.memory_space<vmem>>, vector<8x128xf32>
    %c0_2 = arith.constant 0 : index
    %c0_3 = arith.constant 0 : index
    %4 = vector.load %arg3[%c0_2, %c0_3] : memref<8x32xf32, #tpu.memory_space<vmem>>, vector<8x32xf32>
    %c0_4 = arith.constant 0 : index
    %c0_5 = arith.constant 0 : index
    %5 = vector.load %arg4[%c0_4, %c0_5] : memref<128x32xf32, #tpu.memory_space<vmem>>, vector<128x32xf32>
    %cst = arith.constant dense<0.000000e+00> : vector<8x128xf32>
    %6 = tpu.matmul %4, %5, %cst {dimension_numbers = #tpu.dot_dimension_numbers<[1], [1], [0], [0], [0, 0, 1, 0], [], []>} : vector<8x32xf32>, vector<128x32xf32>, vector<8x128xf32> -> vector<8x128xf32>
    %7 = arith.addf %3, %6 : vector<8x128xf32>
    %c0_6 = arith.constant 0 : index
    %c0_7 = arith.constant 0 : index
    %8 = vector.load %arg8[%c0_6, %c0_7] : memref<8x128xf32, #tpu.memory_space<vmem>>, vector<8x128xf32>
    tpu.vector_store %arg8[%c0_6, %c0_7], %7 {strides = array<i32>} : memref<8x128xf32, #tpu.memory_space<vmem>>, vector<8x128xf32>,
    %c0_i32_8 = arith.constant 0 : i32
    %9 = arith.cmpi eq, %arg2, %c0_i32_8 : i32
    %10 = arith.extui %9 : i1 to i32
    %c0_i32_9 = arith.constant 0 : i32
    %11 = arith.cmpi ne, %10, %c0_i32_9 : i32
    scf.if %11 {
      %c0_10 = arith.constant 0 : index
      %c0_11 = arith.constant 0 : index
      %12 = vector.load %arg8[%c0_10, %c0_11] : memref<8x128xf32, #tpu.memory_space<vmem>>, vector<8x128xf32>
      %c0_12 = arith.constant 0 : index
      %c0_13 = arith.constant 0 : index
      %13 = vector.load %arg5[%c0_12, %c0_13] : memref<8x1xf32, #tpu.memory_space<vmem>>, vector<8x1xf32>
      %14 = vector.broadcast %13 : vector<8x1xf32> to vector<8x128xf32>
      %15 = arith.mulf %12, %14 : vector<8x128xf32>
      %c0_14 = arith.constant 0 : index
      %c0_15 = arith.constant 0 : index
      %16 = vector.load %arg6[%c0_14, %c0_15] : memref<1x128xf32, #tpu.memory_space<vmem>>, vector<1x128xf32>
      %17 = vector.broadcast %16 : vector<1x128xf32> to vector<8x128xf32>
      %18 = arith.mulf %15, %17 : vector<8x128xf32>
      %c0_16 = arith.constant 0 : index
      %c0_17 = arith.constant 0 : index
      %19 = vector.load %arg7[%c0_16, %c0_17] : memref<8x128xf32, #tpu.memory_space<vmem>>, vector<8x128xf32>
      tpu.vector_store %arg7[%c0_16, %c0_17], %18 {strides = array<i32>} : memref<8x128xf32, #tpu.memory_space<vmem>>, vector<8x128xf32>,
    } else {
    }
    return
  }
  func.func @transform_0(%arg0: i32, %arg1: i32, %arg2: i32) -> (i32, i32) {
    %c0_i32 = arith.constant 0 : i32
    return %arg0, %arg2 : i32, i32
  }
  func.func @transform_1(%arg0: i32, %arg1: i32, %arg2: i32) -> (i32, i32) {
    %c0_i32 = arith.constant 0 : i32
    return %arg1, %arg2 : i32, i32
  }
  func.func @transform_2(%arg0: i32, %arg1: i32, %arg2: i32) -> (i32, i32) {
    %c0_i32 = arith.constant 0 : i32
    %c0_i32_0 = arith.constant 0 : i32
    return %arg0, %c0_i32 : i32, i32
  }
  func.func @transform_3(%arg0: i32, %arg1: i32, %arg2: i32) -> (i32, i32) {
    %c0_i32 = arith.constant 0 : i32
    %c0_i32_0 = arith.constant 0 : i32
    return %c0_i32, %arg1 : i32, i32
  }
  func.func @transform_4(%arg0: i32, %arg1: i32, %arg2: i32) -> (i32, i32) {
    %c0_i32 = arith.constant 0 : i32
    return %arg0, %arg1 : i32, i32
  }
}

</mosaic_0001>

<bundles_post_ra>
// kernel: tpu_custom_call.1
= control target key start
LH: loop header
LB: loop body
LE: loop exit
PB: predicated region body
PF: predicated region fallthrough
CT: control target
= control target key end

     0   :  { %vm41_vm0 = vcmask 261120   ;;  %s299_s0 = inlined_call_operand.vmem [shape: f32[8,32], index: 0, kind: input, shape index: {}]   ;;  %s300_s1 = inlined_call_operand.vmem [shape: f32[128,32], index: 1, kind: input, shape index: {}]   ;;  %s301_s2 = inlined_call_operand.vmem [shape: f32[8,1], index: 2, kind: input, shape index: {}]   ;;  %s302_s3 = inlined_call_operand.vmem [shape: f32[1,128], index: 3, kind: input, shape index: {}]   ;;  %s303_s4 = inlined_call_operand.hbm [shape: f32[8,128], index: 4, kind: output, shape index: {}]  }
   0x1   :  { %v40_v0 = vld [vmem:[%s300_s1 + $0x78] sm:$0xff]  ;;  %v39_v1 = vld [vmem:[%s300_s1 + $0x70] sm:$0xff] }
   0x2   :  { %148 = vmatpush.xpose.msk.msra.mxu0 %vm41_vm0, %v40_v0 }
   0x3   :  { %9 = vsyncpa [#allocation4], 0  ;;  %v38_v2 = vld [vmem:[%s300_s1 + $0x68] sm:$0xff]  ;;  %v37_v3 = vld [vmem:[%s300_s1 + $0x60] sm:$0xff]  ;;  %v195_v10 = vmov 0   ;;  %s196_s26 = smov [#allocation3]  }
   0x4   :  { %v36_v4 = vld [vmem:[%s300_s1 + $0x58] sm:$0xff]  ;;  %v35_v5 = vld [vmem:[%s300_s1 + $0x50] sm:$0xff]  ;;  %v34_v6 = vld [vmem:[%s300_s1 + $0x48] sm:$0xff]  ;;  %167 = vset.pattern.permute.xlu0 %v195_v10  ;;  %s137_s27 = sshll.u32 %s196_s26, 4  ;;  %s138_s27 = int_to_ptr.vmem [resolvable:$true] %s137_s27 }
   0x5   :  { %v33_v7 = vld [vmem:[%s300_s1 + $0x40] sm:$0xff]  ;;  %v32_v8 = vld [vmem:[%s300_s1 + $0x38] sm:$0xff]  ;;  %v31_v11 = vld [vmem:[%s300_s1 + $0x30] sm:$0xff] }
   0x6   :  { %149 = vmatpush.xpose.msk.msra.mxu0 %vm41_vm0, %v39_v1  ;;  %v119_v9 = vld [vmem:[%s301_s2] sm:$0xff]  ;;  %v30_v12 = vld [vmem:[%s300_s1 + $0x28] sm:$0xff]  ;;  %v28_v14 = vld [vmem:[%s300_s1 + $0x18] sm:$0xff] }
   0x7   :  { %122 = vperm.xlu0 %167, %v119_v9   ;;  %v29_v13 = vld [vmem:[%s300_s1 + $0x20] sm:$0xff]  ;;  %v27_v15 = vld [vmem:[%s300_s1 + $0x10] sm:$0xff]  ;;  %v26_v16 = vld [vmem:[%s300_s1 + $0x8] sm:$0xff] }
   0x8   :  { %v25_v17 = vld [vmem:[%s300_s1] sm:$0xff]  ;;  %s139_s1 = sshll.u32 %s303_s4, 4  ;;  %s140_s1 = int_to_ptr.hbm [resolvable:$true] %s139_s1 }
   0x9   :  { %v24_v18 = vld [vmem:[%s299_s0] sm:$0xff] }
   0xa   :  { %150 = vmatpush.xpose.msk.msra.mxu0 %vm41_vm0, %v38_v2  ;;  %v168_v20 = vld [vmem:[%s302_s3] ss:$0 sm:$0xff] }
   0xe   :  { %151 = vmatpush.xpose.msk.msra.mxu0 %vm41_vm0, %v37_v3 }
  0x12   :  { %152 = vmatpush.xpose.msk.msra.mxu0 %vm41_vm0, %v36_v4 }
  0x16   :  { %153 = vmatpush.xpose.msk.msra.mxu0 %vm41_vm0, %v35_v5 }
  0x1a   :  { %154 = vmatpush.xpose.msk.msra.mxu0 %vm41_vm0, %v34_v6 }
  0x1e   :  { %155 = vmatpush.xpose.msk.msra.mxu0 %vm41_vm0, %v33_v7 }
  0x22   :  { %156 = vmatpush.xpose.msk.msra.mxu0 %vm41_vm0, %v32_v8 }
  0x26   :  { %157 = vmatpush.xpose.msk.msra.mxu0 %vm41_vm0, %v31_v11 }
  0x2a   :  { %158 = vmatpush.xpose.msk.msra.mxu0 %vm41_vm0, %v30_v12 }
  0x2e   :  { %159 = vmatpush.xpose.msk.msra.mxu0 %vm41_vm0, %v29_v13 }
  0x32   :  { %160 = vmatpush.xpose.msk.msra.mxu0 %vm41_vm0, %v28_v14 }
  0x36   :  { %161 = vmatpush.xpose.msk.msra.mxu0 %vm41_vm0, %v27_v15 }
  0x3a   :  { %162 = vmatpush.xpose.msk.msra.mxu0 %vm41_vm0, %v26_v16 }
  0x3e   :  { %163 = vmatpush.xpose.msk.msra.mxu0 %vm41_vm0, %v25_v17 }
  0x41   :  { %164 = vmatmul.msk.f32.vlgmr.msra.gmra.mxu0 %vm41_vm0, %v24_v18 }
  0x79   :  { %v123_v19 = vpop.permute.xlu0 %122 }
  0xbe   :  { %v110_v21 = vpop.f32.mrf.mxu0 }
  0xbf   :  { %v125_v22 = vmul.f32 %v123_v19, %v110_v21 }
  0xc1   :  { %v130_v23 = vmul.f32 %v168_v20, %v125_v22 }
  0xc3   :  { %131 = vst [vmem:[#allocation3] sm:$0xff] %v130_v23 }
  0xc4   :  { %142 = dma.vmem_to_hbm [thread:$0]  %s138_s27, 128, %s140_s1, [#allocation4]  }
  0xc5   :  { %193 = dma.done.wait [#allocation4], 128  }
  0xc6   :  { %194 = vsyncadd [#allocation4], 4294967168 }
  0xc7   :  { %147 = vsyncpa [#allocation4], 1 }

</bundles_post_ra>
